<compile_context>
chip_gen: v7x
topology: tpu7x:2x2x1
jax: 0.10.0
libtpu: 0.0.40
codegen_flags: <defaults>
</compile_context>

<pallas_src>
import math

import jax
import jax.numpy as jnp
from jax.experimental import pallas as pl
from jax.experimental.pallas import tpu as pltpu


def _round_up(x, m):
    return ((x + m - 1) // m) * m


def _head_attention_kernel(ht_ref, att_ref, ct_ref, attn_ref):
    # ht_ref:   (BB, T, D)  block of BB batch rows, native dtype
    # att_ref:  (1, 1, D)   attention vector (replicated across grid steps)
    # ct_ref:   (BB, 1, D)  pooled context vectors
    # attn_ref: (BB, 1, T)  alignment (softmax over T), T on the lane axis
    bb, _, d = ht_ref.shape
    ht = ht_ref[...]                                             # native dtype

    # scores[b,0,t] = sum_d att[d] * ht[b,t,d]  (batched MXU GEMV, f32 acc)
    att_b = jnp.broadcast_to(att_ref[...], (bb, 1, d))
    s = jnp.einsum("bqd,btd->bqt", att_b, ht,
                   preferred_element_type=jnp.float32)           # (BB, 1, T)

    # softmax over T (the lane axis); exact normalisation
    m = jnp.max(s, axis=-1, keepdims=True)                       # (BB, 1, 1)
    e = jnp.exp(s - m)                                           # (BB, 1, T)
    p = e / jnp.sum(e, axis=-1, keepdims=True)                   # (BB, 1, T) f32

    attn_ref[...] = p.astype(attn_ref.dtype)

    # ct[b,0,d] = sum_t p[b,0,t] * ht[b,t,d]  (batched MXU contraction, f32 acc)
    ct = jnp.einsum("bqt,btd->bqd", p.astype(ht.dtype), ht,
                    preferred_element_type=jnp.float32)          # (BB, 1, D)
    ct_ref[...] = ct.astype(ct_ref.dtype)


def _tpu_budgets():
    """Per-generation VMEM / block budgets (conservative fallbacks if probing fails)."""
    vmem_cap = 128 << 20
    try:
        info = pltpu.get_tpu_info()
        vmem_cap = int(getattr(info, "vmem_capacity_bytes", vmem_cap))
    except Exception:
        pass
    n_cores = 1
    try:
        kind = jax.devices()[0].device_kind.lower()
        if "v7" in kind or "7x" in kind:
            n_cores = 2
    except Exception:
        pass
    if vmem_cap <= (64 << 20):          # v7x-class: 64 MiB per TensorCore, 2 TCs
        n_cores = max(n_cores, 2)
        return dict(vmem_limit=48 << 20, hard_cap=56 << 20,
                    max_block_bytes=8 << 20, n_cores=n_cores)
    # v5e / v6e: 128 MiB physical VMEM, single TensorCore
    return dict(vmem_limit=64 << 20, hard_cap=100 << 20,
                max_block_bytes=12 << 20, n_cores=n_cores)


def _ht_row_vmem_bytes(T, D, itemsize):
    # one batch row of the ht block, as laid out in VMEM ((8,128) tile padding)
    return _round_up(T, 8) * _round_up(D, 128) * itemsize


def _pick_block_batch(B, T, D, itemsize, max_block_bytes, n_cores):
    row = _ht_row_vmem_bytes(T, D, itemsize)
    cap = max(1, max_block_bytes // row)
    divisors = [b for b in range(1, B + 1) if B % b == 0]
    fitting = [b for b in divisors if b <= cap]
    if not fitting:
        # Even a single batch row overflows the per-block budget; fall back to
        # bb=1 and let the VMEM guard in the wrapper decide.
        # TODO(synk): tile T with an online softmax for very long sequences.
        return 1
    bb = max(fitting)
    if n_cores > 1:
        # Megacore: prefer an even number of grid steps so both TensorCores get
        # equal work; otherwise at least 2 steps.
        even = [b for b in fitting if (B // b) % 2 == 0]
        multi = [b for b in fitting if (B // b) >= 2]
        if even:
            bb = max(even)
        elif multi:
            bb = max(multi)
    return bb


def _vmem_estimate(bb, T, D, itemsize):
    # double-buffered input + output blocks, with (8,128) tile padding
    ht_blk = bb * _ht_row_vmem_bytes(T, D, itemsize)
    ct_blk = bb * 8 * _round_up(D, 128) * itemsize
    at_blk = bb * 8 * _round_up(T, 128) * 4
    return 2 * (ht_blk + ct_blk + at_blk)


def head_attention_forward(ht, att, *, block_batch=None):
    """ht: (B, T, D) float, att: (D, 1) or (D,) float.

    Returns (ct (B, D), attention_score (B, T, 1)), matching the eval-mode
    forward of the PyTorch HeadAttention module.
    """
    B, T, D = ht.shape
    att3 = jnp.asarray(att, dtype=ht.dtype).reshape(1, 1, D)

    budgets = _tpu_budgets()
    bb = block_batch if block_batch is not None else _pick_block_batch(
        B, T, D, ht.dtype.itemsize, budgets["max_block_bytes"], budgets["n_cores"])
    assert B % bb == 0, "block_batch must divide the batch dimension"

    est = _vmem_estimate(bb, T, D, ht.dtype.itemsize) + (2 << 20)  # + temporaries
    vmem_limit = max(budgets["vmem_limit"], est)
    if vmem_limit > budgets["hard_cap"]:
        # TODO(synk): add a T-tiled (online-softmax) variant for sequences whose
        # single batch row does not fit the scoped VMEM budget.
        raise ValueError(
            f"HeadAttention block (bb={bb}, T={T}, D={D}) needs ~{est >> 20} MiB "
            f"VMEM, exceeding the {budgets['hard_cap'] >> 20} MiB budget on this TPU.")

    grid = (B // bb,)
    grid_spec = pltpu.PrefetchScalarGridSpec(
        num_scalar_prefetch=0,
        grid=grid,
        in_specs=[
            pl.BlockSpec((bb, T, D), lambda i: (i, 0, 0)),   # ht block
            pl.BlockSpec((1, 1, D), lambda i: (0, 0, 0)),    # att (replicated)
        ],
        out_specs=[
            pl.BlockSpec((bb, 1, D), lambda i: (i, 0, 0)),   # ct
            pl.BlockSpec((bb, 1, T), lambda i: (i, 0, 0)),   # attention weights
        ],
    )

    ct3, attn3 = pl.pallas_call(
        _head_attention_kernel,
        out_shape=(
            jax.ShapeDtypeStruct((B, 1, D), ht.dtype),
            jax.ShapeDtypeStruct((B, 1, T), jnp.float32),
        ),
        grid_spec=grid_spec,
        compiler_params=pltpu.CompilerParams(
            dimension_semantics=("parallel",),
            vmem_limit_bytes=int(vmem_limit),
        ),
    )(ht, att3)

    ct = ct3.reshape(B, D)
    # same element order as torch's .view(B, T, 1)
    attn = attn3.reshape(B, T, 1)
    return ct, attn


def _reference(ht, att):
    att_vec = jnp.asarray(att).reshape(-1)
    scores = jnp.einsum("btd,d->bt", ht, att_vec)          # (B, T)
    p = jax.nn.softmax(scores, axis=-1)                    # softmax over T
    ct = jnp.einsum("btd,bt->bd", ht, p)                   # (B, D)
    return ct, p[:, :, None]


if __name__ == "__main__":
    # Small shapes consistent with the module:
    #   encoder_size=32, heads_number=4 -> embedding_size D=8; batch=4, seq=8
    B, T, encoder_size, heads_number = 4, 8, 32, 4
    D = encoder_size // heads_number

    key0 = jax.random.PRNGKey(0)
    k_ht, k_att = jax.random.split(key0)

    ht = jax.random.normal(k_ht, (B, T, D), dtype=jnp.float32)

    # xavier_normal_ for att (D, 1): std = sqrt(2 / (fan_in + fan_out))
    xavier_std = math.sqrt(2.0 / (D + 1))
    att = xavier_std * jax.random.normal(k_att, (D, 1), dtype=jnp.float32)

    ct, attn = head_attention_forward(ht, att)
    jax.block_until_ready((ct, attn))

    ct_ref, attn_ref = _reference(ht, att)
    assert ct.shape == (B, D) and attn.shape == (B, T, 1)
    assert jnp.allclose(ct, ct_ref, atol=1e-4, rtol=1e-4), \
        float(jnp.max(jnp.abs(ct - ct_ref)))
    assert jnp.allclose(attn, attn_ref, atol=1e-4, rtol=1e-4), \
        float(jnp.max(jnp.abs(attn - attn_ref)))

    print("KERNEL_OK")
</pallas_src>

<mosaic_0001>
module attributes {stable_mosaic.version = 11 : i64} {
  func.func @_head_attention_kernel(%arg0: i32, %arg1: memref<4x8x8xf32, #tpu.memory_space<vmem>>, %arg2: memref<1x1x8xf32, #tpu.memory_space<vmem>>, %arg3: memref<4x1x8xf32, #tpu.memory_space<vmem>>, %arg4: memref<4x1x8xf32, #tpu.memory_space<vmem>>) attributes {dimension_semantics = [#tpu.dimension_semantics<parallel>], iteration_bounds = array<i64: 1>, scalar_prefetch = 0 : i64, scratch_operands = 0 : i64, tpu.core_type = #tpu.core_type<tc>, window_params = [{transform_indices = @transform_0, window_bounds = array<i64: 4, 8, 8>}, {pipeline_mode = #tpu.pipeline_mode<synchronous>, transform_indices = @transform_1, window_bounds = array<i64: 1, 1, 8>}, {transform_indices = @transform_2, window_bounds = array<i64: 4, 1, 8>}, {transform_indices = @transform_3, window_bounds = array<i64: 4, 1, 8>}]} {
    %c0 = arith.constant 0 : index
    %c0_0 = arith.constant 0 : index
    %c0_1 = arith.constant 0 : index
    %0 = vector.load %arg1[%c0, %c0_0, %c0_1] : memref<4x8x8xf32, #tpu.memory_space<vmem>>, vector<4x8x8xf32>
    %c0_2 = arith.constant 0 : index
    %c0_3 = arith.constant 0 : index
    %c0_4 = arith.constant 0 : index
    %1 = vector.load %arg2[%c0_2, %c0_3, %c0_4] : memref<1x1x8xf32, #tpu.memory_space<vmem>>, vector<1x1x8xf32>
    %2 = vector.shape_cast %1 : vector<1x1x8xf32> to vector<1x1x8xf32>
    %3 = vector.broadcast %2 : vector<1x1x8xf32> to vector<4x1x8xf32>
    "tpu.trace_start"() <{level = 10 : i32, message = "bqd,btd->bqt"}> : () -> ()
    %cst = arith.constant dense<0.000000e+00> : vector<4x1x8xf32>
    %4 = tpu.matmul %3, %0, %cst {dimension_numbers = #tpu.dot_dimension_numbers<[2], [2], [1], [1], [0, 0, 0, 1, 1, 1], [0], [0]>} : vector<4x1x8xf32>, vector<4x8x8xf32>, vector<4x1x8xf32> -> vector<4x1x8xf32>
    "tpu.trace_stop"() : () -> ()
    %cst_5 = arith.constant dense<0xFF800000> : vector<4x1xf32>
    %5 = vector.multi_reduction <maximumf>, %4, %cst_5 [2] : vector<4x1x8xf32> to vector<4x1xf32>
    %6 = vector.shape_cast %5 : vector<4x1xf32> to vector<4x1x1xf32>
    %7 = vector.broadcast %6 : vector<4x1x1xf32> to vector<4x1x8xf32>
    %8 = arith.subf %4, %7 : vector<4x1x8xf32>
    %9 = math.exp %8 : vector<4x1x8xf32>
    %cst_6 = arith.constant dense<0.000000e+00> : vector<4x1xf32>
    %10 = vector.multi_reduction <add>, %9, %cst_6 [2] : vector<4x1x8xf32> to vector<4x1xf32>
    %11 = vector.shape_cast %10 : vector<4x1xf32> to vector<4x1x1xf32>
    %12 = vector.broadcast %11 : vector<4x1x1xf32> to vector<4x1x8xf32>
    %13 = arith.divf %9, %12 : vector<4x1x8xf32>
    %c0_7 = arith.constant 0 : index
    %c0_8 = arith.constant 0 : index
    %c0_9 = arith.constant 0 : index
    %14 = vector.load %arg4[%c0_7, %c0_8, %c0_9] : memref<4x1x8xf32, #tpu.memory_space<vmem>>, vector<4x1x8xf32>
    tpu.vector_store %arg4[%c0_7, %c0_8, %c0_9], %13 {strides = array<i32>} : memref<4x1x8xf32, #tpu.memory_space<vmem>>, vector<4x1x8xf32>,
    "tpu.trace_start"() <{level = 10 : i32, message = "bqt,btd->bqd"}> : () -> ()
    %cst_10 = arith.constant dense<0.000000e+00> : vector<4x1x8xf32>
    %15 = tpu.matmul %13, %0, %cst_10 {dimension_numbers = #tpu.dot_dimension_numbers<[2], [1], [1], [2], [0, 0, 0, 1, 1, 2], [0], [0]>} : vector<4x1x8xf32>, vector<4x8x8xf32>, vector<4x1x8xf32> -> vector<4x1x8xf32>
    "tpu.trace_stop"() : () -> ()
    %c0_11 = arith.constant 0 : index
    %c0_12 = arith.constant 0 : index
    %c0_13 = arith.constant 0 : index
    %16 = vector.load %arg3[%c0_11, %c0_12, %c0_13] : memref<4x1x8xf32, #tpu.memory_space<vmem>>, vector<4x1x8xf32>
    tpu.vector_store %arg3[%c0_11, %c0_12, %c0_13], %15 {strides = array<i32>} : memref<4x1x8xf32, #tpu.memory_space<vmem>>, vector<4x1x8xf32>,
    return
  }
  func.func @transform_0(%arg0: i32) -> (i32, i32, i32) {
    %c0_i32 = arith.constant 0 : i32
    %c0_i32_0 = arith.constant 0 : i32
    %c0_i32_1 = arith.constant 0 : i32
    return %arg0, %c0_i32, %c0_i32_0 : i32, i32, i32
  }
  func.func @transform_1(%arg0: i32) -> (i32, i32, i32) {
    %c0_i32 = arith.constant 0 : i32
    %c0_i32_0 = arith.constant 0 : i32
    %c0_i32_1 = arith.constant 0 : i32
    %c0_i32_2 = arith.constant 0 : i32
    return %c0_i32, %c0_i32_0, %c0_i32_1 : i32, i32, i32
  }
  func.func @transform_2(%arg0: i32) -> (i32, i32, i32) {
    %c0_i32 = arith.constant 0 : i32
    %c0_i32_0 = arith.constant 0 : i32
    %c0_i32_1 = arith.constant 0 : i32
    return %arg0, %c0_i32, %c0_i32_0 : i32, i32, i32
  }
  func.func @transform_3(%arg0: i32) -> (i32, i32, i32) {
    %c0_i32 = arith.constant 0 : i32
    %c0_i32_0 = arith.constant 0 : i32
    %c0_i32_1 = arith.constant 0 : i32
    return %arg0, %c0_i32, %c0_i32_0 : i32, i32, i32
  }
}

</mosaic_0001>

<bundles_post_ra>
// kernel: tpu_custom_call.1
= control target key start
LH: loop header
LB: loop body
LE: loop exit
PB: predicated region body
PF: predicated region fallthrough
CT: control target
= control target key end

     0   :  { %9 = vsyncpa [#allocation3], 0  ;;  %s1055_s0 = inlined_call_operand.hbm [shape: f32[4,8,8], index: 0, kind: input, shape index: {}]   ;;  %s1056_s1 = inlined_call_operand.hbm [shape: f32[1,1,8], index: 1, kind: input, shape index: {}]   ;;  %s1057_s2 = inlined_call_operand.hbm [shape: f32[4,1,8], index: 2, kind: output, shape index: {0}]   ;;  %s1058_s3 = inlined_call_operand.hbm [shape: f32[4,1,8], index: 3, kind: output, shape index: {1}]  }
   0x1   :  { %10 = vsyncpa [#allocation6], 0 }
   0x2   :  { %11 = vsyncpa [#allocation4], 0 }
   0x3   :  { %12 = vsyncpa [#allocation9], 0  ;;  %s911_s12 = smov [#allocation2]   ;;  %s815_s16 = scalar_lea.hbm %s1055_s0, 512 }
   0x4   :  { %s18_s13 = sshll.u32 %s911_s12, 4  ;;  %p816_p0 = scmp.ne.s32.totalorder %s1055_s0, %s815_s16  ;;  %s19_s13 = int_to_ptr.vmem [resolvable:$true] %s18_s13 }
   0x5   :  { %p819_p1 = scmp.lt.u32.totalorder %s815_s16, %s1055_s0 }
   0x7   :  { %p821_p2 = pnand %p819_p1, %p816_p0 }
   0x9   :  { %824 = shalt.err (!%p821_p2)
}
   0xa   :  { %s825_s21 = scalar_lea.vmem %s19_s13, 512  ;;  %p830_p4 = scmp.lt.s32.totalorder %s19_s13, %s19_s13 }
   0xb   :  { %p826_p3 = scmp.ne.s32.totalorder %s19_s13, %s825_s21  ;;  %p831_p5 = scmp.lt.s32.totalorder %s825_s21, %s825_s21 }
   0xd   :  { %p832_p6 = por %p831_p5, %p830_p4 }
   0xf   :  { %p833_p7 = pnand %p832_p6, %p826_p3 }
  0x11   :  { %836 = shalt.err (!%p833_p7)
}
  0x12   :  { %s912_s22 = smov 128   ;;  %s913_s23 = smov 8  }
  0x13   :  { %24 = dma.hbm_to_vmem [thread:$0]  %s1055_s0, 512, %s19_s13, [#allocation3], %s912_s22, %s912_s22, %s913_s23  }
  0x14   :  { %s914_s26 = smov [#allocation5]   ;;  %s837_s30 = scalar_lea.hbm %s1056_s1, 16 }
  0x15   :  { %s31_s27 = sshll.u32 %s914_s26, 4  ;;  %p838_p8 = scmp.ne.s32.totalorder %s1056_s1, %s837_s30  ;;  %s32_s27 = int_to_ptr.vmem [resolvable:$true] %s31_s27 }
  0x16   :  { %p841_p9 = scmp.lt.u32.totalorder %s837_s30, %s1056_s1 }
  0x18   :  { %p843_p10 = pnand %p841_p9, %p838_p8 }
  0x1a   :  { %846 = shalt.err (!%p843_p10)
}
  0x1b   :  { %s847_s8 = scalar_lea.vmem %s32_s27, 16  ;;  %s851_s0 = scalar_lea.vmem %s32_s27, 32 }
  0x1c   :  { %p848_p11 = scmp.ne.s32.totalorder %s32_s27, %s847_s8  ;;  %p852_p12 = scmp.lt.s32.totalorder %s32_s27, %s32_s27 }
  0x1d   :  { %p853_p13 = scmp.lt.s32.totalorder %s851_s0, %s847_s8 }
  0x1f   :  { %p854_p0 = por %p853_p13, %p852_p12 }
  0x21   :  { %p855_p1 = pnand %p854_p0, %p848_p11 }
  0x23   :  { %858 = shalt.err (!%p855_p1)
}
  0x24   :  { %34 = dma.hbm_to_vmem [thread:$0]  %s1056_s1, 16, %s32_s27, [#allocation6]  }
  0x25   :  { %903 = dma.done.wait [#allocation3], 512  }
  0x26   :  { %904 = vsyncadd [#allocation3], 4294966784 }
  0x27   :  { %905 = dma.done.wait [#allocation6], 16  }
  0x28   :  { %906 = vsyncadd [#allocation6], 4294967280  ;;  %v915_v0 = vmov 0.0   ;;  %vm916_vm0 = vmmov 0   ;;  %vm46_vm1 = vcmask 64512   ;;  %v41_v1 = vld [vmem:[#allocation2] sm:$0xff] }
  0x29   :  { %749 = vmatprep.subr.mxu0 %v915_v0  ;;  %751 = vmatprep.mubr.msk.f32.mxu0 %vm916_vm0, %v915_v0  ;;  %v42_v2 = vld [vmem:[#allocation2 + $0x8] sm:$0xff]  ;;  %v45_v3 = vld [vmem:[#allocation5] sm:$0x1]  ;;  %v974_v4 = vld [vmem:[#allocation2 + $0x10] sm:$0xff]  ;;  %vm342_vm2 = vcmask 57344   ;;  %s917_s1 = smov [#allocation8]  }
  0x2a   :  { %754 = vmatprep.subr.mxu1 %v915_v0  ;;  %756 = vmatprep.mubr.msk.f32.mxu1 %vm916_vm0, %v915_v0  ;;  %v977_v5 = vld [vmem:[#allocation2 + $0x18] sm:$0xff]  ;;  %s704_s11 = sshll.u32 %s917_s1, 4  ;;  %s705_s11 = int_to_ptr.vmem [resolvable:$true] %s704_s11 }
  0x2b   :  { %750 = vmatpush3.xpose.msk.msra.mxu0 %vm46_vm1, %v41_v1  ;;  %755 = vmatpush3.xpose.msk.msra.mxu1 %vm46_vm1, %v42_v2  ;;  %s859_s12 = scalar_lea.vmem %s705_s11, 64  ;;  %p864_p3 = scmp.lt.s32.totalorder %s705_s11, %s705_s11 }
  0x2c   :  { %759 = vmatprep.subr.mxu0 %v915_v0  ;;  %764 = vmatprep.subr.mxu1 %v915_v0  ;;  %p860_p2 = scmp.ne.s32.totalorder %s705_s11, %s859_s12  ;;  %p865_p4 = scmp.lt.s32.totalorder %s859_s12, %s859_s12 }
  0x2e   :  { %752 = vmatmul.mubr.msk.f32.vlgmr.msra.gmra.mrb[0].mxu0 %vm46_vm1, %v45_v3  ;;  %757 = vmatmul.mubr.msk.f32.vlgmr.msra.gmra.mrb[0].mxu1 %vm46_vm1, %v45_v3  ;;  %p866_p5 = por %p865_p4, %p864_p3 }
  0x2f   :  { %760 = vmatpush3.xpose.msk.msra.mxu0 %vm46_vm1, %v974_v4  ;;  %761 = vmatprep.mubr.msk.f32.mxu0 %vm916_vm0, %v915_v0 }
  0x30   :  { %765 = vmatpush3.xpose.msk.msra.mxu1 %vm46_vm1, %v977_v5  ;;  %766 = vmatprep.mubr.msk.f32.mxu1 %vm916_vm0, %v915_v0  ;;  %p867_p6 = pnand %p866_p5, %p860_p2 }
  0x31   :  { %769 = vmatprep.subr.mxu0 %v915_v0  ;;  %774 = vmatprep.subr.mxu1 %v915_v0 }
  0x32   :  { %762 = vmatmul.mubr.msk.f32.vlgmr.msra.gmra.mrb[2].mxu0 %vm46_vm1, %v45_v3 }
  0x33   :  { %767 = vmatmul.mubr.msk.f32.vlgmr.msra.gmra.mrb[2].mxu1 %vm46_vm1, %v45_v3  ;;  %770 = vmatpush3.msra.mxu0 %v41_v1 }
  0x34   :  { %771 = vmatprep.mubr.msk.f32.mxu0 %vm916_vm0, %v915_v0  ;;  %775 = vmatpush3.msra.mxu1 %v42_v2 }
  0x35   :  { %779 = vmatprep.subr.mxu0 %v915_v0  ;;  %776 = vmatprep.mubr.msk.f32.mxu1 %vm916_vm0, %v915_v0 }
  0x36   :  { %784 = vmatprep.subr.mxu1 %v915_v0 }
 0x101   :  { %v119_v6 = vpop.f32.mrb[0].mxu0  ;;  %v192_v7 = vpop.f32.mrb[0].mxu1 }
 0x102   :  { %v753_v8 = vpop.f32.mrb[1].mxu0  ;;  %v343_v9 = vsel %vm342_vm2, %v119_v6, -inf  ;;  %v758_v10 = vpop.f32.mrb[1].mxu1  ;;  %v346_v11 = vsel %vm342_vm2, %v192_v7, -inf }
 0x103   :  { %344 = vmax.xlane.f32.xlu0 %v343_v9 }
 0x105   :  { %v265_v12 = vpop.f32.mrb[2].mxu0 }
 0x106   :  { %v763_v13 = vpop.f32.mrb[3].mxu0  ;;  %v349_v14 = vsel %vm342_vm2, %v265_v12, -inf  ;;  %v338_v15 = vpop.f32.mrb[2].mxu1 }
 0x107   :  { %347 = vmax.xlane.f32.xlu0 %v346_v11  ;;  %350 = vmax.xlane.f32.xlu1 %v349_v14  ;;  %v768_v16 = vpop.f32.mrb[3].mxu1  ;;  %v352_v17 = vsel %vm342_vm2, %v338_v15, -inf }
 0x10b   :  { %353 = vmax.xlane.f32.xlu1 %v352_v17 }
 0x190   :  { %v345_v18 = vpop.xlane.xlu0 %344 }
 0x191   :  { %v355_v19 = vsub.f32 %v119_v6, %v345_v18 }
 0x193   :  { %v359_v20 = vmul.f32 1.442695, %v355_v19 }
 0x194   :  { %v348_v21 = vpop.xlane.xlu0 %347  ;;  %v351_v22 = vpop.xlane.xlu1 %350 }
 0x195   :  { %799 = vpow2.f32 %v359_v20  ;;  %v356_v23 = vsub.f32 %v192_v7, %v348_v21  ;;  %v357_v24 = vsub.f32 %v265_v12, %v351_v22 }
 0x197   :  { %v361_v25 = vmul.f32 1.442695, %v356_v23  ;;  %v363_v26 = vmul.f32 1.442695, %v357_v24 }
 0x198   :  { %v354_v27 = vpop.xlane.xlu1 %353 }
 0x199   :  { %801 = vpow2.f32 %v361_v25  ;;  %v358_v28 = vsub.f32 %v338_v15, %v354_v27 }
 0x19a   :  { %803 = vpow2.f32 %v363_v26 }
 0x19b   :  { %v365_v29 = vmul.f32 1.442695, %v358_v28 }
 0x19d   :  { %805 = vpow2.f32 %v365_v29 }
 0x19f   :  { %v800_v30 = vpop.eup %799 }
 0x1a0   :  { %v367_v31 = vsel %vm342_vm2, %v800_v30, 0.0 }
 0x1a1   :  { %368 = vadd.xlane.f32.xlu0 %v367_v31 }
 0x1a3   :  { %v802_v32 = vpop.eup %801 }
 0x1a4   :  { %v804_v33 = vpop.eup %803  ;;  %v370_v34 = vsel %vm342_vm2, %v802_v32, 0.0 }
 0x1a5   :  { %371 = vadd.xlane.f32.xlu1 %v370_v34  ;;  %v373_v35 = vsel %vm342_vm2, %v804_v33, 0.0 }
 0x1a6   :  { %374 = vadd.xlane.f32.xlu0 %v373_v35 }
 0x1a7   :  { %v806_v36 = vpop.eup %805 }
 0x1a8   :  { %v376_v37 = vsel %vm342_vm2, %v806_v36, 0.0 }
 0x1a9   :  { %377 = vadd.xlane.f32.xlu1 %v376_v37 }
 0x22e   :  { %v369_v38 = vpop.xlane.xlu0 %368 }
 0x22f   :  { %807 = vrcp.f32 %v369_v38 }
 0x232   :  { %v372_v39 = vpop.xlane.xlu1 %371 }
 0x233   :  { %v375_v40 = vpop.xlane.xlu0 %374  ;;  %809 = vrcp.f32 %v372_v39 }
 0x234   :  { %811 = vrcp.f32 %v375_v40 }
 0x236   :  { %v378_v41 = vpop.xlane.xlu1 %377 }
 0x237   :  { %813 = vrcp.f32 %v378_v41 }
 0x239   :  { %v808_v42 = vpop.eup %807 }
 0x23a   :  { %v380_v43 = vmul.f32 %v808_v42, %v800_v30 }
 0x23c   :  { %387 = vst.msk [vmem:[#allocation8] sm:$0x1] %vm342_vm2, %v380_v43  ;;  %772 = vmatmul.mubr.msk.f32.vlgmr.msra.gmra.mrb[4].mxu0 %vm46_vm1, %v380_v43 }
 0x23d   :  { %v810_v44 = vpop.eup %809  ;;  %780 = vmatpush3.msra.mxu0 %v974_v4  ;;  %781 = vmatprep.mubr.msk.f32.mxu0 %vm916_vm0, %v915_v0 }
 0x23e   :  { %v812_v45 = vpop.eup %811  ;;  %v382_v46 = vmul.f32 %v810_v44, %v802_v32 }
 0x23f   :  { %v384_v47 = vmul.f32 %v812_v45, %v804_v33 }
 0x240   :  { %388 = vst.msk [vmem:[#allocation8 + $0x1] sm:$0x1] %vm342_vm2, %v382_v46  ;;  %777 = vmatmul.mubr.msk.f32.vlgmr.msra.gmra.mrb[4].mxu1 %vm46_vm1, %v382_v46 }
 0x241   :  { %v814_v48 = vpop.eup %813  ;;  %389 = vst.msk [vmem:[#allocation8 + $0x2] sm:$0x1] %vm342_vm2, %v384_v47  ;;  %782 = vmatmul.mubr.msk.f32.vlgmr.msra.gmra.mrb[6].mxu0 %vm46_vm1, %v384_v47  ;;  %785 = vmatpush3.msra.mxu1 %v977_v5 }
 0x242   :  { %v386_v49 = vmul.f32 %v814_v48, %v806_v36  ;;  %786 = vmatprep.mubr.msk.f32.mxu1 %vm916_vm0, %v915_v0 }
 0x244   :  { %390 = vst.msk [vmem:[#allocation8 + $0x3] sm:$0x1] %vm342_vm2, %v386_v49  ;;  %787 = vmatmul.mubr.msk.f32.vlgmr.msra.gmra.mrb[6].mxu1 %vm46_vm1, %v386_v49 }
 0x245   :  { %870 = shalt.err (!%p867_p6)
}
 0x246   :  { %s871_s15 = scalar_lea.hbm %s1058_s3, 64 }
 0x247   :  { %p872_p7 = scmp.ne.s32.totalorder %s1058_s3, %s871_s15  ;;  %p875_p8 = scmp.lt.u32.totalorder %s871_s15, %s1058_s3 }
 0x249   :  { %p877_p9 = pnand %p875_p8, %p872_p7 }
 0x24b   :  { %880 = shalt.err (!%p877_p9)
}
 0x24c   :  { %s918_s20 = smov 16   ;;  %s919_s21 = smov 1  }
 0x24d   :  { %710 = dma.vmem_to_hbm [thread:$0]  %s705_s11, 64, %s1058_s3, [#allocation9], %s918_s20, %s918_s20, %s919_s21  }
 0x24e   :  { %s920_s24 = smov [#allocation7]  }
 0x24f   :  { %s692_s25 = sshll.u32 %s920_s24, 4  ;;  %s693_s25 = int_to_ptr.vmem [resolvable:$true] %s692_s25 }
 0x250   :  { %s881_s3 = scalar_lea.vmem %s693_s25, 64  ;;  %p886_p11 = scmp.lt.s32.totalorder %s693_s25, %s693_s25 }
 0x251   :  { %p882_p10 = scmp.ne.s32.totalorder %s693_s25, %s881_s3  ;;  %p887_p12 = scmp.lt.s32.totalorder %s881_s3, %s881_s3 }
 0x253   :  { %p888_p13 = por %p887_p12, %p886_p11 }
 0x255   :  { %p889_p0 = pnand %p888_p13, %p882_p10 }
 0x30f   :  { %v460_v50 = vpop.f32.mrb[4].mxu0 }
 0x310   :  { %683 = vst.msk [vmem:[#allocation7] sm:$0x1] %vm342_vm2, %v460_v50  ;;  %v773_v51 = vpop.f32.mrb[5].mxu0 }
 0x313   :  { %v533_v52 = vpop.f32.mrb[4].mxu1 }
 0x314   :  { %684 = vst.msk [vmem:[#allocation7 + $0x1] sm:$0x1] %vm342_vm2, %v533_v52  ;;  %v606_v53 = vpop.f32.mrb[6].mxu0  ;;  %v778_v54 = vpop.f32.mrb[5].mxu1 }
 0x315   :  { %685 = vst.msk [vmem:[#allocation7 + $0x2] sm:$0x1] %vm342_vm2, %v606_v53  ;;  %v783_v55 = vpop.f32.mrb[7].mxu0 }
 0x317   :  { %v679_v56 = vpop.f32.mrb[6].mxu1 }
 0x318   :  { %686 = vst.msk [vmem:[#allocation7 + $0x3] sm:$0x1] %vm342_vm2, %v679_v56  ;;  %v788_v57 = vpop.f32.mrb[7].mxu1 }
 0x319   :  { %892 = shalt.err (!%p889_p0)
}
 0x31a   :  { %s893_s28 = scalar_lea.hbm %s1057_s2, 64 }
 0x31b   :  { %p894_p1 = scmp.ne.s32.totalorder %s1057_s2, %s893_s28  ;;  %p897_p2 = scmp.lt.u32.totalorder %s893_s28, %s1057_s2 }
 0x31d   :  { %p899_p3 = pnand %p897_p2, %p894_p1 }
 0x31f   :  { %902 = shalt.err (!%p899_p3)
}
 0x320   :  { %698 = dma.vmem_to_hbm [thread:$0]  %s693_s25, 64, %s1057_s2, [#allocation4], %s918_s20, %s918_s20, %s919_s21  }
 0x321   :  { %907 = dma.done.wait [#allocation4], 64  }
 0x322   :  { %908 = vsyncadd [#allocation4], 4294967232 }
 0x323   :  { %909 = dma.done.wait [#allocation9], 64  }
 0x324   :  { %910 = vsyncadd [#allocation9], 4294967232 }
 0x325   :  { %717 = vsyncpa [#allocation3], 1 }
 0x326   :  { %718 = vsyncpa [#allocation6], 1 }
 0x327   :  { %719 = vsyncpa [#allocation4], 1 }
 0x328   :  { %720 = vsyncpa [#allocation9], 1 }

</bundles_post_ra>
